<compile_context>
chip_gen: v6e
topology: v6e:2x2x1
jax: 0.10.0
libtpu: 0.0.40
codegen_flags: <defaults>
</compile_context>

<pallas_src>
import functools

import jax
import jax.numpy as jnp
from jax import lax
from jax.experimental import pallas as pl
from jax.experimental.pallas import tpu as pltpu


def _round_up(n, m):
    return ((n + m - 1) // m) * m


# ----------------------------------------------------------------------------
# Fused kernel:  lerp(params) -> x @ W1.T + b1 -> ReLU -> @ W2.T + b2
# ----------------------------------------------------------------------------
def fused_interp_mlp_kernel(lam_ref,
                            x_ref,
                            w1a_ref, w1b_ref, b1a_ref, b1b_ref,
                            w2a_ref, w2b_ref, b2a_ref, b2b_ref,
                            o_ref):
    lam = lam_ref[0, 0]                       # runtime scalar from SMEM
    one_minus_lam = 1.0 - lam

    def lerp(a_ref, b_ref):
        # Interpolate in f32 on the VPU (precision-safe even for bf16 params).
        return (lam * a_ref[...].astype(jnp.float32)
                + one_minus_lam * b_ref[...].astype(jnp.float32))

    x = x_ref[...]                            # [TB, D_in_p]
    cdt = x.dtype                             # dtype fed to the MXU

    w1 = lerp(w1a_ref, w1b_ref).astype(cdt)   # [H_p, D_in_p]  (PyTorch layout)
    b1 = lerp(b1a_ref, b1b_ref)               # [1, H_p]       f32
    w2 = lerp(w2a_ref, w2b_ref).astype(cdt)   # [D_out_p, H_p]
    b2 = lerp(b2a_ref, b2b_ref)               # [1, D_out_p]   f32

    # y = x @ W.T expressed as dot_general with the RHS contracting on dim 1
    # -> MXU matmul with transposed RHS, no wrapper-side transpose copies.
    h = lax.dot_general(x, w1, (((1,), (1,)), ((), ())),
                        preferred_element_type=jnp.float32)
    h = jnp.maximum(h + b1, 0.0).astype(cdt)  # ReLU on the VPU
    y = lax.dot_general(h, w2, (((1,), (1,)), ((), ())),
                        preferred_element_type=jnp.float32)
    o_ref[...] = (y + b2).astype(o_ref.dtype)


# ----------------------------------------------------------------------------
# Wrapper: pad to TPU tile granularity, launch one fused kernel, slice output.
# ----------------------------------------------------------------------------
def interpolated_mlp_forward(x, params_a, params_b, lambda_val, *,
                             batch_tile=128):
    """x: [B, D_in]; params_*: (w1 [H,D_in], b1 [H], w2 [D_out,H], b2 [D_out])."""
    w1a, b1a, w2a, b2a = params_a
    w1b, b1b, w2b, b2b = params_b
    B, D_in = x.shape
    H, _ = w1a.shape
    D_out, _ = w2a.shape

    LANE, SUB = 128, 8
    D_in_p = _round_up(D_in, LANE)
    H_p = _round_up(H, LANE)
    D_out_p = _round_up(D_out, LANE)
    TB = min(_round_up(B, SUB), batch_tile)   # batch tile (multiple of 8)
    B_p = _round_up(B, TB)

    def pad2(a, rows, cols):
        return jnp.pad(a, ((0, rows - a.shape[0]), (0, cols - a.shape[1])))

    def pad_bias(b, cols):
        return jnp.pad(b.reshape(1, -1), ((0, 0), (0, cols - b.shape[0])))

    x_p = pad2(x, B_p, D_in_p)
    w1a_p = pad2(w1a, H_p, D_in_p)
    w1b_p = pad2(w1b, H_p, D_in_p)
    w2a_p = pad2(w2a, D_out_p, H_p)
    w2b_p = pad2(w2b, D_out_p, H_p)
    b1a_p = pad_bias(b1a, H_p)
    b1b_p = pad_bias(b1b, H_p)
    b2a_p = pad_bias(b2a, D_out_p)
    b2b_p = pad_bias(b2b, D_out_p)

    lam = jnp.asarray(lambda_val, dtype=jnp.float32).reshape(1, 1)

    resident = lambda i: (0, 0)               # weights/biases stay in VMEM

    out_p = pl.pallas_call(
        fused_interp_mlp_kernel,
        out_shape=jax.ShapeDtypeStruct((B_p, D_out_p), x.dtype),
        grid=(B_p // TB,),
        in_specs=[
            pl.BlockSpec(memory_space=pltpu.MemorySpace.SMEM),   # lambda scalar
            pl.BlockSpec((TB, D_in_p), lambda i: (i, 0)),        # x batch tile
            pl.BlockSpec((H_p, D_in_p), resident),               # w1a
            pl.BlockSpec((H_p, D_in_p), resident),               # w1b
            pl.BlockSpec((1, H_p), resident),                    # b1a
            pl.BlockSpec((1, H_p), resident),                    # b1b
            pl.BlockSpec((D_out_p, H_p), resident),              # w2a
            pl.BlockSpec((D_out_p, H_p), resident),              # w2b
            pl.BlockSpec((1, D_out_p), resident),                # b2a
            pl.BlockSpec((1, D_out_p), resident),                # b2b
        ],
        out_specs=pl.BlockSpec((TB, D_out_p), lambda i: (i, 0)),
        compiler_params=pltpu.CompilerParams(
            dimension_semantics=("parallel",)),
        # TODO(synk): for large H/D_in, tile H/D_out over additional grid axes
        # and budget resident weights against v7x's 64 MiB VMEM.
    )(lam, x_p, w1a_p, w1b_p, b1a_p, b1b_p, w2a_p, w2b_p, b2a_p, b2b_p)

    return out_p[:B, :D_out]


# ----------------------------------------------------------------------------
# Pure-JAX reference (mirrors the PyTorch module semantics).
# ----------------------------------------------------------------------------
def _reference(x, params_a, params_b, lambda_val):
    w1a, b1a, w2a, b2a = params_a
    w1b, b1b, w2b, b2b = params_b
    lam = lambda_val
    w1 = lam * w1a + (1 - lam) * w1b
    b1 = lam * b1a + (1 - lam) * b1b
    w2 = lam * w2a + (1 - lam) * w2b
    b2 = lam * b2a + (1 - lam) * b2b
    h = jnp.maximum(x @ w1.T + b1, 0.0)
    return h @ w2.T + b2


if __name__ == "__main__":
    # Small shapes consistent with the MLP instantiation of net_a / net_b.
    B, D_in, H, D_out = 8, 16, 32, 8

    key = jax.random.PRNGKey(0)
    k = jax.random.split(key, 9)

    x = jax.random.normal(k[0], (B, D_in), dtype=jnp.float32)

    # net_a parameters (PyTorch nn.Linear layout: [out, in] weights)
    params_a = [
        jax.random.normal(k[1], (H, D_in), dtype=jnp.float32) * 0.1,
        jax.random.normal(k[2], (H,), dtype=jnp.float32) * 0.1,
        jax.random.normal(k[3], (D_out, H), dtype=jnp.float32) * 0.1,
        jax.random.normal(k[4], (D_out,), dtype=jnp.float32) * 0.1,
    ]
    # net_b parameters (same shapes, different values)
    params_b = [
        jax.random.normal(k[5], (H, D_in), dtype=jnp.float32) * 0.1,
        jax.random.normal(k[6], (H,), dtype=jnp.float32) * 0.1,
        jax.random.normal(k[7], (D_out, H), dtype=jnp.float32) * 0.1,
        jax.random.normal(k[8], (D_out,), dtype=jnp.float32) * 0.1,
    ]

    fwd = jax.jit(interpolated_mlp_forward)

    # Two different lambdas through the SAME compiled function: lambda is a
    # runtime SMEM scalar, so no retrace / recompile per value.
    for lambda_val in (0.3, 0.75):
        out = fwd(x, params_a, params_b, jnp.float32(lambda_val))
        out = jax.block_until_ready(out)
        ref = _reference(x, params_a, params_b, lambda_val)
        assert out.shape == (B, D_out)
        assert jnp.allclose(out, ref, atol=1e-5, rtol=1e-5), \
            f"mismatch vs reference at lambda={lambda_val}"

    print("KERNEL_OK")
</pallas_src>

<mosaic_0001>
module attributes {stable_mosaic.version = 11 : i64} {
  func.func @fused_interp_mlp_kernel(%arg0: i32, %arg1: memref<1x1xf32, #tpu.memory_space<smem>>, %arg2: memref<8x128xf32, #tpu.memory_space<vmem>>, %arg3: memref<128x128xf32, #tpu.memory_space<vmem>>, %arg4: memref<128x128xf32, #tpu.memory_space<vmem>>, %arg5: memref<1x128xf32, #tpu.memory_space<vmem>>, %arg6: memref<1x128xf32, #tpu.memory_space<vmem>>, %arg7: memref<128x128xf32, #tpu.memory_space<vmem>>, %arg8: memref<128x128xf32, #tpu.memory_space<vmem>>, %arg9: memref<1x128xf32, #tpu.memory_space<vmem>>, %arg10: memref<1x128xf32, #tpu.memory_space<vmem>>, %arg11: memref<8x128xf32, #tpu.memory_space<vmem>>) attributes {dimension_semantics = [#tpu.dimension_semantics<parallel>], iteration_bounds = array<i64: 1>, scalar_prefetch = 0 : i64, scratch_operands = 0 : i64, tpu.core_type = #tpu.core_type<tc>, window_params = [{transform_indices = @transform_0, window_bounds = array<i64: 1, 1>}, {transform_indices = @transform_1, window_bounds = array<i64: 8, 128>}, {pipeline_mode = #tpu.pipeline_mode<synchronous>, transform_indices = @transform_2, window_bounds = array<i64: 128, 128>}, {pipeline_mode = #tpu.pipeline_mode<synchronous>, transform_indices = @transform_3, window_bounds = array<i64: 128, 128>}, {pipeline_mode = #tpu.pipeline_mode<synchronous>, transform_indices = @transform_4, window_bounds = array<i64: 1, 128>}, {pipeline_mode = #tpu.pipeline_mode<synchronous>, transform_indices = @transform_5, window_bounds = array<i64: 1, 128>}, {pipeline_mode = #tpu.pipeline_mode<synchronous>, transform_indices = @transform_6, window_bounds = array<i64: 128, 128>}, {pipeline_mode = #tpu.pipeline_mode<synchronous>, transform_indices = @transform_7, window_bounds = array<i64: 128, 128>}, {pipeline_mode = #tpu.pipeline_mode<synchronous>, transform_indices = @transform_8, window_bounds = array<i64: 1, 128>}, {pipeline_mode = #tpu.pipeline_mode<synchronous>, transform_indices = @transform_9, window_bounds = array<i64: 1, 128>}, {transform_indices = @transform_10, window_bounds = array<i64: 8, 128>}]} {
    %c0 = arith.constant 0 : index
    %c0_0 = arith.constant 0 : index
    %0 = memref.load %arg1[%c0, %c0_0] : memref<1x1xf32, #tpu.memory_space<smem>>
    %cst = arith.constant 1.000000e+00 : f32
    %1 = arith.subf %cst, %0 : f32
    %c0_1 = arith.constant 0 : index
    %c0_2 = arith.constant 0 : index
    %2 = vector.load %arg2[%c0_1, %c0_2] : memref<8x128xf32, #tpu.memory_space<vmem>>, vector<8x128xf32>
    %c0_3 = arith.constant 0 : index
    %c0_4 = arith.constant 0 : index
    %3 = vector.load %arg3[%c0_3, %c0_4] : memref<128x128xf32, #tpu.memory_space<vmem>>, vector<128x128xf32>
    %4 = vector.broadcast %0 : f32 to vector<128x128xf32>
    %5 = arith.mulf %4, %3 : vector<128x128xf32>
    %c0_5 = arith.constant 0 : index
    %c0_6 = arith.constant 0 : index
    %6 = vector.load %arg4[%c0_5, %c0_6] : memref<128x128xf32, #tpu.memory_space<vmem>>, vector<128x128xf32>
    %7 = vector.broadcast %1 : f32 to vector<128x128xf32>
    %8 = arith.mulf %7, %6 : vector<128x128xf32>
    %9 = arith.addf %5, %8 : vector<128x128xf32>
    %c0_7 = arith.constant 0 : index
    %c0_8 = arith.constant 0 : index
    %10 = vector.load %arg5[%c0_7, %c0_8] : memref<1x128xf32, #tpu.memory_space<vmem>>, vector<1x128xf32>
    %11 = vector.broadcast %0 : f32 to vector<1x128xf32>
    %12 = arith.mulf %11, %10 : vector<1x128xf32>
    %c0_9 = arith.constant 0 : index
    %c0_10 = arith.constant 0 : index
    %13 = vector.load %arg6[%c0_9, %c0_10] : memref<1x128xf32, #tpu.memory_space<vmem>>, vector<1x128xf32>
    %14 = vector.broadcast %1 : f32 to vector<1x128xf32>
    %15 = arith.mulf %14, %13 : vector<1x128xf32>
    %16 = arith.addf %12, %15 : vector<1x128xf32>
    %c0_11 = arith.constant 0 : index
    %c0_12 = arith.constant 0 : index
    %17 = vector.load %arg7[%c0_11, %c0_12] : memref<128x128xf32, #tpu.memory_space<vmem>>, vector<128x128xf32>
    %18 = vector.broadcast %0 : f32 to vector<128x128xf32>
    %19 = arith.mulf %18, %17 : vector<128x128xf32>
    %c0_13 = arith.constant 0 : index
    %c0_14 = arith.constant 0 : index
    %20 = vector.load %arg8[%c0_13, %c0_14] : memref<128x128xf32, #tpu.memory_space<vmem>>, vector<128x128xf32>
    %21 = vector.broadcast %1 : f32 to vector<128x128xf32>
    %22 = arith.mulf %21, %20 : vector<128x128xf32>
    %23 = arith.addf %19, %22 : vector<128x128xf32>
    %c0_15 = arith.constant 0 : index
    %c0_16 = arith.constant 0 : index
    %24 = vector.load %arg9[%c0_15, %c0_16] : memref<1x128xf32, #tpu.memory_space<vmem>>, vector<1x128xf32>
    %25 = vector.broadcast %0 : f32 to vector<1x128xf32>
    %26 = arith.mulf %25, %24 : vector<1x128xf32>
    %c0_17 = arith.constant 0 : index
    %c0_18 = arith.constant 0 : index
    %27 = vector.load %arg10[%c0_17, %c0_18] : memref<1x128xf32, #tpu.memory_space<vmem>>, vector<1x128xf32>
    %28 = vector.broadcast %1 : f32 to vector<1x128xf32>
    %29 = arith.mulf %28, %27 : vector<1x128xf32>
    %30 = arith.addf %26, %29 : vector<1x128xf32>
    %cst_19 = arith.constant dense<0.000000e+00> : vector<8x128xf32>
    %31 = tpu.matmul %2, %9, %cst_19 {dimension_numbers = #tpu.dot_dimension_numbers<[1], [1], [0], [0], [0, 0, 1, 0], [], []>} : vector<8x128xf32>, vector<128x128xf32>, vector<8x128xf32> -> vector<8x128xf32>
    %32 = vector.broadcast %16 : vector<1x128xf32> to vector<8x128xf32>
    %33 = arith.addf %31, %32 : vector<8x128xf32>
    %cst_20 = arith.constant 0.000000e+00 : f32
    %34 = vector.broadcast %cst_20 : f32 to vector<8x128xf32>
    %35 = arith.maximumf %33, %34 : vector<8x128xf32>
    %cst_21 = arith.constant dense<0.000000e+00> : vector<8x128xf32>
    %36 = tpu.matmul %35, %23, %cst_21 {dimension_numbers = #tpu.dot_dimension_numbers<[1], [1], [0], [0], [0, 0, 1, 0], [], []>} : vector<8x128xf32>, vector<128x128xf32>, vector<8x128xf32> -> vector<8x128xf32>
    %37 = vector.broadcast %30 : vector<1x128xf32> to vector<8x128xf32>
    %38 = arith.addf %36, %37 : vector<8x128xf32>
    %c0_22 = arith.constant 0 : index
    %c0_23 = arith.constant 0 : index
    %39 = vector.load %arg11[%c0_22, %c0_23] : memref<8x128xf32, #tpu.memory_space<vmem>>, vector<8x128xf32>
    tpu.vector_store %arg11[%c0_22, %c0_23], %38 {strides = array<i32>} : memref<8x128xf32, #tpu.memory_space<vmem>>, vector<8x128xf32>,
    return
  }
  func.func @transform_0(%arg0: i32) -> (i32, i32) {
    %c0_i32 = arith.constant 0 : i32
    %c0_i32_0 = arith.constant 0 : i32
    %c0_i32_1 = arith.constant 0 : i32
    return %c0_i32, %c0_i32_0 : i32, i32
  }
  func.func @transform_1(%arg0: i32) -> (i32, i32) {
    %c0_i32 = arith.constant 0 : i32
    %c0_i32_0 = arith.constant 0 : i32
    return %arg0, %c0_i32 : i32, i32
  }
  func.func @transform_2(%arg0: i32) -> (i32, i32) {
    %c0_i32 = arith.constant 0 : i32
    %c0_i32_0 = arith.constant 0 : i32
    %c0_i32_1 = arith.constant 0 : i32
    return %c0_i32, %c0_i32_0 : i32, i32
  }
  func.func @transform_3(%arg0: i32) -> (i32, i32) {
    %c0_i32 = arith.constant 0 : i32
    %c0_i32_0 = arith.constant 0 : i32
    %c0_i32_1 = arith.constant 0 : i32
    return %c0_i32, %c0_i32_0 : i32, i32
  }
  func.func @transform_4(%arg0: i32) -> (i32, i32) {
    %c0_i32 = arith.constant 0 : i32
    %c0_i32_0 = arith.constant 0 : i32
    %c0_i32_1 = arith.constant 0 : i32
    return %c0_i32, %c0_i32_0 : i32, i32
  }
  func.func @transform_5(%arg0: i32) -> (i32, i32) {
    %c0_i32 = arith.constant 0 : i32
    %c0_i32_0 = arith.constant 0 : i32
    %c0_i32_1 = arith.constant 0 : i32
    return %c0_i32, %c0_i32_0 : i32, i32
  }
  func.func @transform_6(%arg0: i32) -> (i32, i32) {
    %c0_i32 = arith.constant 0 : i32
    %c0_i32_0 = arith.constant 0 : i32
    %c0_i32_1 = arith.constant 0 : i32
    return %c0_i32, %c0_i32_0 : i32, i32
  }
  func.func @transform_7(%arg0: i32) -> (i32, i32) {
    %c0_i32 = arith.constant 0 : i32
    %c0_i32_0 = arith.constant 0 : i32
    %c0_i32_1 = arith.constant 0 : i32
    return %c0_i32, %c0_i32_0 : i32, i32
  }
  func.func @transform_8(%arg0: i32) -> (i32, i32) {
    %c0_i32 = arith.constant 0 : i32
    %c0_i32_0 = arith.constant 0 : i32
    %c0_i32_1 = arith.constant 0 : i32
    return %c0_i32, %c0_i32_0 : i32, i32
  }
  func.func @transform_9(%arg0: i32) -> (i32, i32) {
    %c0_i32 = arith.constant 0 : i32
    %c0_i32_0 = arith.constant 0 : i32
    %c0_i32_1 = arith.constant 0 : i32
    return %c0_i32, %c0_i32_0 : i32, i32
  }
  func.func @transform_10(%arg0: i32) -> (i32, i32) {
    %c0_i32 = arith.constant 0 : i32
    %c0_i32_0 = arith.constant 0 : i32
    return %arg0, %c0_i32 : i32, i32
  }
}

</mosaic_0001>

<bundles_post_ra>
// kernel: interpolated_mlp_forward.1
= control target key start
LH: loop header
LB: loop body
LE: loop exit
PB: predicated region body
PF: predicated region fallthrough
CT: control target
= control target key end

     0   :  { %v509_v4 = vmov 0.0   ;;  %vm510_vm0 = vmmov 0   ;;  %s889_s0 = inlined_call_operand.<no memory space> [shape: f32[1,1], index: 0, kind: input, shape index: {}]   ;;  %s890_s1 = inlined_call_operand.vmem [shape: f32[8,128], index: 1, kind: input, shape index: {}]   ;;  %s891_s2 = inlined_call_operand.vmem [shape: f32[128,128], index: 2, kind: input, shape index: {}]   ;;  %s892_s3 = inlined_call_operand.vmem [shape: f32[128,128], index: 3, kind: input, shape index: {}]   ;;  %s893_s4 = inlined_call_operand.vmem [shape: f32[1,128], index: 4, kind: input, shape index: {}]   ;;  %s894_s5 = inlined_call_operand.vmem [shape: f32[1,128], index: 5, kind: input, shape index: {}]   ;;  %s895_s6 = inlined_call_operand.vmem [shape: f32[128,128], index: 6, kind: input, shape index: {}]   ;;  %s896_s7 = inlined_call_operand.vmem [shape: f32[128,128], index: 7, kind: input, shape index: {}]   ;;  %s897_s8 = inlined_call_operand.vmem [shape: f32[1,128], index: 8, kind: input, shape index: {}]   ;;  %s898_s9 = inlined_call_operand.vmem [shape: f32[1,128], index: 9, kind: input, shape index: {}]   ;;  %s899_s10 = inlined_call_operand.hbm [shape: f32[8,128], index: 10, kind: output, shape index: {}]  }
   0x1   :  { %s38_s15 = ssub.f32 1.0, %s889_s0  ;;  %v55_v0 = vld [vmem:[%s891_s2 + $0x78] sm:$0xff]  ;;  %v576_v1 = vstv %s889_s0  ;;  %v54_v3 = vld [vmem:[%s891_s2 + $0x70] sm:$0xff]  ;;  %414 = vmatprep.subr.mxu0 %v509_v4  ;;  %446 = vmatprep.mubr.msk.f32.mxu0 %vm510_vm0, %v509_v4  ;;  %v53_v11 = vld [vmem:[%s891_s2 + $0x68] sm:$0xff] }
   0x2   :  { %v88_v2 = vld [vmem:[%s892_s3 + $0x78] sm:$0xff]  ;;  %v72_v5 = vmul.f32 %v576_v1, %v55_v0  ;;  %v87_v6 = vld [vmem:[%s892_s3 + $0x70] sm:$0xff]  ;;  %449 = vmatprep.subr.mxu1 %v509_v4  ;;  %481 = vmatprep.mubr.msk.f32.mxu1 %vm510_vm0, %v509_v4  ;;  %v71_v9 = vmul.f32 %v576_v1, %v54_v3  ;;  %v86_v12 = vld [vmem:[%s892_s3 + $0x68] sm:$0xff]  ;;  %v70_v15 = vmul.f32 %v576_v1, %v53_v11 }
   0x3   :  { %v590_v7 = vstv %s38_s15  ;;  %v52_v17 = vld [vmem:[%s891_s2 + $0x60] sm:$0xff]  ;;  %v142_v22 = vld [vmem:[%s895_s6 + $0x78] sm:$0xff]  ;;  %v141_v24 = vld [vmem:[%s895_s6 + $0x70] sm:$0xff] }
   0x4   :  { %v105_v8 = vmul.f32 %v590_v7, %v88_v2  ;;  %v104_v10 = vmul.f32 %v590_v7, %v87_v6  ;;  %v103_v16 = vmul.f32 %v590_v7, %v86_v12  ;;  %v85_v18 = vld [vmem:[%s892_s3 + $0x60] sm:$0xff]  ;;  %v69_v20 = vmul.f32 %v576_v1, %v52_v17  ;;  %v174_v23 = vld [vmem:[%s896_s7 + $0x78] sm:$0xff]  ;;  %v173_v27 = vld [vmem:[%s896_s7 + $0x70] sm:$0xff] }
   0x5   :  { %v102_v21 = vmul.f32 %v590_v7, %v85_v18  ;;  %v51_v25 = vld [vmem:[%s891_s2 + $0x58] sm:$0xff]  ;;  %v158_v28 = vmul.f32 %v142_v22, %v576_v1  ;;  %v190_v29 = vmul.f32 %v174_v23, %v590_v7  ;;  %v157_v30 = vmul.f32 %v141_v24, %v576_v1  ;;  %v140_v35 = vld [vmem:[%s895_s6 + $0x68] sm:$0xff]  ;;  %v50_v37 = vld [vmem:[%s891_s2 + $0x50] sm:$0xff] }
   0x6   :  { %v121_v13 = vadd.f32 %v105_v8, %v72_v5  ;;  %v120_v14 = vadd.f32 %v104_v10, %v71_v9  ;;  %v119_v19 = vadd.f32 %v103_v16, %v70_v15  ;;  %v84_v26 = vld [vmem:[%s892_s3 + $0x58] sm:$0xff]  ;;  %v189_v31 = vmul.f32 %v173_v27, %v590_v7  ;;  %v172_v36 = vld [vmem:[%s896_s7 + $0x68] sm:$0xff]  ;;  %v83_v38 = vld [vmem:[%s892_s3 + $0x50] sm:$0xff] }
   0x7   :  { %v118_v32 = vadd.f32 %v102_v21, %v69_v20  ;;  %v68_v33 = vmul.f32 %v576_v1, %v51_v25  ;;  %v101_v34 = vmul.f32 %v590_v7, %v84_v26  ;;  %v206_v39 = vadd.f32 %v190_v29, %v158_v28  ;;  %v139_v46 = vld [vmem:[%s895_s6 + $0x60] sm:$0xff]  ;;  %v49_v48 = vld [vmem:[%s891_s2 + $0x48] sm:$0xff] }
   0x8   :  { %415 = vmatpush3.xpose.msra.mxu0 %v121_v13  ;;  %v205_v40 = vadd.f32 %v189_v31, %v157_v30  ;;  %v156_v41 = vmul.f32 %v140_v35, %v576_v1  ;;  %v188_v42 = vmul.f32 %v172_v36, %v590_v7  ;;  %v67_v44 = vmul.f32 %v576_v1, %v50_v37  ;;  %v171_v47 = vld [vmem:[%s896_s7 + $0x60] sm:$0xff]  ;;  %v82_v49 = vld [vmem:[%s892_s3 + $0x48] sm:$0xff] }
   0x9   :  { %416 = vmatprep.subr.mxu0 %v509_v4  ;;  %450 = vmatpush3.xpose.msra.mxu1 %v206_v39  ;;  %v117_v43 = vadd.f32 %v101_v34, %v68_v33  ;;  %v100_v45 = vmul.f32 %v590_v7, %v83_v38 }
   0xa   :  { %451 = vmatprep.subr.mxu1 %v509_v4 }
   0xc   :  { %417 = vmatpush3.xpose.msra.mxu0 %v120_v14 }
   0xd   :  { %418 = vmatprep.subr.mxu0 %v509_v4 }
  0x10   :  { %419 = vmatpush3.xpose.msra.mxu0 %v119_v19 }
  0x11   :  { %420 = vmatprep.subr.mxu0 %v509_v4 }
  0x14   :  { %421 = vmatpush3.xpose.msra.mxu0 %v118_v32 }
  0x15   :  { %422 = vmatprep.subr.mxu0 %v509_v4 }
  0x16   :  { %16 = vsyncpa [#allocation4], 0  ;;  %452 = vmatpush3.xpose.msra.mxu1 %v205_v40  ;;  %v204_v50 = vadd.f32 %v188_v42, %v156_v41  ;;  %v155_v51 = vmul.f32 %v139_v46, %v576_v1  ;;  %v187_v52 = vmul.f32 %v171_v47, %v590_v7  ;;  %v116_v53 = vadd.f32 %v100_v45, %v67_v44  ;;  %v138_v56 = vld [vmem:[%s895_s6 + $0x58] sm:$0xff]  ;;  %v48_v58 = vld [vmem:[%s891_s2 + $0x40] sm:$0xff] }
  0x17   :  { %v66_v54 = vmul.f32 %v576_v1, %v49_v48  ;;  %v99_v55 = vmul.f32 %v590_v7, %v82_v49  ;;  %453 = vmatprep.subr.mxu1 %v509_v4  ;;  %v170_v57 = vld [vmem:[%s896_s7 + $0x58] sm:$0xff]  ;;  %v81_v59 = vld [vmem:[%s892_s3 + $0x40] sm:$0xff]  ;;  %v154_v61 = vmul.f32 %v138_v56, %v576_v1  ;;  %v65_v0 = vmul.f32 %v576_v1, %v48_v58  ;;  %v137_v3 = vld [vmem:[%s895_s6 + $0x50] sm:$0xff] }
  0x18   :  { %423 = vmatpush3.xpose.msra.mxu0 %v117_v43  ;;  %v203_v60 = vadd.f32 %v187_v52, %v155_v51  ;;  %v186_v62 = vmul.f32 %v170_v57, %v590_v7  ;;  %v98_v2 = vmul.f32 %v590_v7, %v81_v59  ;;  %v169_v5 = vld [vmem:[%s896_s7 + $0x50] sm:$0xff]  ;;  %v47_v6 = vld [vmem:[%s891_s2 + $0x38] sm:$0xff]  ;;  %v153_v10 = vmul.f32 %v137_v3, %v576_v1  ;;  %v136_v15 = vld [vmem:[%s895_s6 + $0x48] sm:$0xff] }
  0x19   :  { %424 = vmatprep.subr.mxu0 %v509_v4  ;;  %v115_v63 = vadd.f32 %v99_v55, %v66_v54  ;;  %v80_v8 = vld [vmem:[%s892_s3 + $0x38] sm:$0xff]  ;;  %v185_v11 = vmul.f32 %v169_v5, %v590_v7  ;;  %v64_v13 = vmul.f32 %v576_v1, %v47_v6  ;;  %v168_v16 = vld [vmem:[%s896_s7 + $0x48] sm:$0xff]  ;;  %v46_v17 = vld [vmem:[%s891_s2 + $0x30] sm:$0xff]  ;;  %v152_v20 = vmul.f32 %v136_v15, %v576_v1 }
  0x1a   :  { %454 = vmatpush3.xpose.msra.mxu1 %v204_v50  ;;  %v202_v9 = vadd.f32 %v186_v62, %v154_v61  ;;  %v114_v12 = vadd.f32 %v98_v2, %v65_v0  ;;  %v97_v14 = vmul.f32 %v590_v7, %v80_v8  ;;  %v79_v18 = vld [vmem:[%s892_s3 + $0x30] sm:$0xff]  ;;  %v184_v21 = vmul.f32 %v168_v16, %v590_v7  ;;  %v135_v25 = vld [vmem:[%s895_s6 + $0x40] sm:$0xff]  ;;  %v45_v27 = vld [vmem:[%s891_s2 + $0x28] sm:$0xff] }
  0x1b   :  { %455 = vmatprep.subr.mxu1 %v509_v4  ;;  %v201_v19 = vadd.f32 %v185_v11, %v153_v10  ;;  %v63_v23 = vmul.f32 %v576_v1, %v46_v17  ;;  %v96_v24 = vmul.f32 %v590_v7, %v79_v18  ;;  %v167_v26 = vld [vmem:[%s896_s7 + $0x40] sm:$0xff]  ;;  %v78_v28 = vld [vmem:[%s892_s3 + $0x28] sm:$0xff]  ;;  %v151_v30 = vmul.f32 %v135_v25, %v576_v1  ;;  %v134_v35 = vld [vmem:[%s895_s6 + $0x38] sm:$0xff] }
  0x1c   :  { %425 = vmatpush3.xpose.msra.mxu0 %v116_v53  ;;  %v113_v22 = vadd.f32 %v97_v14, %v64_v13  ;;  %v200_v29 = vadd.f32 %v184_v21, %v152_v20  ;;  %v183_v31 = vmul.f32 %v167_v26, %v590_v7  ;;  %v62_v33 = vmul.f32 %v576_v1, %v45_v27  ;;  %v166_v36 = vld [vmem:[%s896_s7 + $0x38] sm:$0xff]  ;;  %v44_v37 = vld [vmem:[%s891_s2 + $0x20] sm:$0xff]  ;;  %v133_v45 = vld [vmem:[%s895_s6 + $0x30] sm:$0xff] }
  0x1d   :  { %426 = vmatprep.subr.mxu0 %v509_v4  ;;  %v112_v32 = vadd.f32 %v96_v24, %v63_v23  ;;  %v95_v34 = vmul.f32 %v590_v7, %v78_v28  ;;  %v77_v38 = vld [vmem:[%s892_s3 + $0x20] sm:$0xff]  ;;  %v150_v40 = vmul.f32 %v134_v35, %v576_v1  ;;  %v182_v41 = vmul.f32 %v166_v36, %v590_v7  ;;  %v165_v46 = vld [vmem:[%s896_s7 + $0x30] sm:$0xff]  ;;  %v43_v47 = vld [vmem:[%s891_s2 + $0x18] sm:$0xff] }
  0x1e   :  { %456 = vmatpush3.xpose.msra.mxu1 %v203_v60  ;;  %v199_v39 = vadd.f32 %v183_v31, %v151_v30  ;;  %v61_v43 = vmul.f32 %v576_v1, %v44_v37  ;;  %v94_v44 = vmul.f32 %v590_v7, %v77_v38  ;;  %v76_v48 = vld [vmem:[%s892_s3 + $0x18] sm:$0xff]  ;;  %v149_v50 = vmul.f32 %v133_v45, %v576_v1  ;;  %v132_v55 = vld [vmem:[%s895_s6 + $0x28] sm:$0xff]  ;;  %v42_v57 = vld [vmem:[%s891_s2 + $0x10] sm:$0xff] }
  0x1f   :  { %457 = vmatprep.subr.mxu1 %v509_v4  ;;  %v111_v42 = vadd.f32 %v95_v34, %v62_v33  ;;  %v198_v49 = vadd.f32 %v182_v41, %v150_v40  ;;  %v181_v51 = vmul.f32 %v165_v46, %v590_v7  ;;  %v60_v53 = vmul.f32 %v576_v1, %v43_v47  ;;  %v164_v56 = vld [vmem:[%s896_s7 + $0x28] sm:$0xff]  ;;  %v75_v58 = vld [vmem:[%s892_s3 + $0x10] sm:$0xff]  ;;  %v131_v2 = vld [vmem:[%s895_s6 + $0x20] sm:$0xff] }
  0x20   :  { %427 = vmatpush3.xpose.msra.mxu0 %v115_v63  ;;  %v110_v52 = vadd.f32 %v94_v44, %v61_v43  ;;  %v93_v54 = vmul.f32 %v590_v7, %v76_v48  ;;  %v148_v60 = vmul.f32 %v132_v55, %v576_v1  ;;  %v180_v61 = vmul.f32 %v164_v56, %v590_v7  ;;  %v163_v3 = vld [vmem:[%s896_s7 + $0x20] sm:$0xff]  ;;  %v41_v5 = vld [vmem:[%s891_s2 + $0x8] sm:$0xff]  ;;  %v130_v14 = vld [vmem:[%s895_s6 + $0x18] sm:$0xff] }
  0x21   :  { %428 = vmatprep.subr.mxu0 %v509_v4  ;;  %v197_v59 = vadd.f32 %v181_v51, %v149_v50  ;;  %v59_v63 = vmul.f32 %v576_v1, %v42_v57  ;;  %v92_v0 = vmul.f32 %v590_v7, %v75_v58  ;;  %v74_v6 = vld [vmem:[%s892_s3 + $0x8] sm:$0xff]  ;;  %v179_v10 = vmul.f32 %v163_v3, %v590_v7  ;;  %v162_v15 = vld [vmem:[%s896_s7 + $0x18] sm:$0xff]  ;;  %v40_v16 = vld [vmem:[%s891_s2] sm:$0xff] }
  0x22   :  { %458 = vmatpush3.xpose.msra.mxu1 %v202_v9  ;;  %v109_v62 = vadd.f32 %v93_v54, %v60_v53  ;;  %v196_v8 = vadd.f32 %v180_v61, %v148_v60  ;;  %v147_v9 = vmul.f32 %v131_v2, %v576_v1  ;;  %v91_v13 = vmul.f32 %v590_v7, %v74_v6  ;;  %v73_v17 = vld [vmem:[%s892_s3] sm:$0xff]  ;;  %v129_v24 = vld [vmem:[%s895_s6 + $0x10] sm:$0xff]  ;;  %v128_v30 = vld [vmem:[%s895_s6 + $0x8] sm:$0xff] }
  0x23   :  { %459 = vmatprep.subr.mxu1 %v509_v4  ;;  %v108_v11 = vadd.f32 %v92_v0, %v59_v63  ;;  %v178_v20 = vmul.f32 %v162_v15, %v590_v7  ;;  %v90_v23 = vmul.f32 %v590_v7, %v73_v17  ;;  %v161_v25 = vld [vmem:[%s896_s7 + $0x10] sm:$0xff]  ;;  %v145_v27 = vmul.f32 %v129_v24, %v576_v1  ;;  %v160_v31 = vld [vmem:[%s896_s7 + $0x8] sm:$0xff]  ;;  %v39_v35 = vld [vmem:[%s890_s1] sm:$0xff] }
  0x24   :  { %429 = vmatpush3.xpose.msra.mxu0 %v114_v12  ;;  %v58_v12 = vmul.f32 %v576_v1, %v41_v5  ;;  %v195_v18 = vadd.f32 %v179_v10, %v147_v9  ;;  %v177_v28 = vmul.f32 %v161_v25, %v590_v7  ;;  %v144_v33 = vmul.f32 %v128_v30, %v576_v1  ;;  %v127_v37 = vld [vmem:[%s895_s6] sm:$0xff] }
  0x25   :  { %430 = vmatprep.subr.mxu0 %v509_v4  ;;  %v176_v34 = vmul.f32 %v160_v31, %v590_v7  ;;  %v159_v38 = vld [vmem:[%s896_s7] sm:$0xff] }
  0x26   :  { %460 = vmatpush3.xpose.msra.mxu1 %v201_v19  ;;  %v146_v19 = vmul.f32 %v130_v14, %v576_v1  ;;  %v107_v21 = vadd.f32 %v91_v13, %v58_v12  ;;  %v175_v40 = vmul.f32 %v159_v38, %v590_v7  ;;  %v122_v43 = vld [vmem:[%s893_s4] sm:$0x1] }
  0x27   :  { %461 = vmatprep.subr.mxu1 %v509_v4  ;;  %v192_v36 = vadd.f32 %v176_v34, %v144_v33  ;;  %v123_v44 = vmul.f32 %v122_v43, %v576_v1  ;;  %v207_v54 = vld [vmem:[%s897_s8] sm:$0x1] }
  0x28   :  { %431 = vmatpush3.xpose.msra.mxu0 %v113_v22  ;;  %v57_v22 = vmul.f32 %v576_v1, %v40_v16  ;;  %v194_v26 = vadd.f32 %v178_v20, %v146_v19  ;;  %v209_v55 = vld [vmem:[%s898_s9] sm:$0x1]  ;;  %v208_v56 = vmul.f32 %v207_v54, %v576_v1 }
  0x29   :  { %432 = vmatprep.subr.mxu0 %v509_v4  ;;  %v210_v57 = vmul.f32 %v209_v55, %v590_v7 }
  0x2a   :  { %462 = vmatpush3.xpose.msra.mxu1 %v200_v29  ;;  %v106_v29 = vadd.f32 %v90_v23, %v57_v22 }
  0x2b   :  { %463 = vmatprep.subr.mxu1 %v509_v4  ;;  %v211_v58 = vadd.f32 %v210_v57, %v208_v56 }
  0x2c   :  { %433 = vmatpush3.xpose.msra.mxu0 %v112_v32  ;;  %v193_v32 = vadd.f32 %v177_v28, %v145_v27 }
  0x2d   :  { %434 = vmatprep.subr.mxu0 %v509_v4 }
  0x2e   :  { %464 = vmatpush3.xpose.msra.mxu1 %v199_v39  ;;  %v143_v39 = vmul.f32 %v127_v37, %v576_v1 }
  0x2f   :  { %465 = vmatprep.subr.mxu1 %v509_v4 }
  0x30   :  { %435 = vmatpush3.xpose.msra.mxu0 %v111_v42  ;;  %v191_v41 = vadd.f32 %v175_v40, %v143_v39  ;;  %v213_v42 = vlaneseq }
  0x31   :  { %436 = vmatprep.subr.mxu0 %v509_v4 }
  0x32   :  { %466 = vmatpush3.xpose.msra.mxu1 %v198_v49  ;;  %v214_v46 = vshrl.u32 %v213_v42, 7 }
  0x33   :  { %467 = vmatprep.subr.mxu1 %v509_v4 }
  0x34   :  { %437 = vmatpush3.xpose.msra.mxu0 %v110_v52  ;;  %v215_v48 = vsub.s32 0, %v214_v46 }
  0x35   :  { %438 = vmatprep.subr.mxu0 %v509_v4 }
  0x36   :  { %468 = vmatpush3.xpose.msra.mxu1 %v197_v59  ;;  %v293_v59 = vrot.slane %v211_v58, %v215_v48 }
  0x37   :  { %469 = vmatprep.subr.mxu1 %v509_v4 }
  0x38   :  { %439 = vmatpush3.xpose.msra.mxu0 %v109_v62 }
  0x39   :  { %440 = vmatprep.subr.mxu0 %v509_v4 }
  0x3a   :  { %470 = vmatpush3.xpose.msra.mxu1 %v196_v8 }
  0x3b   :  { %471 = vmatprep.subr.mxu1 %v509_v4 }
  0x3c   :  { %441 = vmatpush3.xpose.msra.mxu0 %v108_v11 }
  0x3d   :  { %442 = vmatprep.subr.mxu0 %v509_v4 }
  0x3e   :  { %472 = vmatpush3.xpose.msra.mxu1 %v195_v18 }
  0x3f   :  { %473 = vmatprep.subr.mxu1 %v509_v4 }
  0x40   :  { %443 = vmatpush3.xpose.msra.mxu0 %v107_v21 }
  0x41   :  { %444 = vmatprep.subr.mxu0 %v509_v4 }
  0x42   :  { %474 = vmatpush3.xpose.msra.mxu1 %v194_v26 }
  0x43   :  { %475 = vmatprep.subr.mxu1 %v509_v4 }
  0x44   :  { %445 = vmatpush3.xpose.msra.mxu0 %v106_v29 }
  0x46   :  { %476 = vmatpush3.xpose.msra.mxu1 %v193_v32 }
  0x47   :  { %447 = vmatmul.mubr.f32.vlgmr.msra.gmra.mxu0 %v39_v35  ;;  %477 = vmatprep.subr.mxu1 %v509_v4 }
  0x4a   :  { %478 = vmatpush3.xpose.msra.mxu1 %v192_v36 }
  0x4b   :  { %479 = vmatprep.subr.mxu1 %v509_v4  ;;  %v124_v4 = vld [vmem:[%s894_s5] sm:$0x1]  ;;  %s511_s5 = smov [#allocation3]  }
  0x4c   :  { %v125_v45 = vmul.f32 %v124_v4, %v590_v7  ;;  %s372_s24 = sshll.u32 %s511_s5, 4  ;;  %s373_s24 = int_to_ptr.vmem [resolvable:$true] %s372_s24 }
  0x4d   :  { %s487_s25 = scalar_lea.vmem %s373_s24, 128  ;;  %p492_p1 = scmp.lt.s32.totalorder %s373_s24, %s373_s24 }
  0x4e   :  { %480 = vmatpush3.xpose.msra.mxu1 %v191_v41  ;;  %v126_v47 = vadd.f32 %v125_v45, %v123_v44  ;;  %p488_p0 = scmp.ne.s32.totalorder %s373_s24, %s487_s25  ;;  %p493_p2 = scmp.lt.s32.totalorder %s487_s25, %s487_s25 }
  0x50   :  { %v216_v49 = vrot.slane %v126_v47, %v215_v48  ;;  %p494_p3 = por %p493_p2, %p492_p1 }
  0x52   :  { %p495_p4 = pnand %p494_p3, %p488_p0 }
 0x107   :  { %v284_v50 = vpop.f32.mrf.mxu0 }
 0x108   :  { %v285_v51 = vadd.f32 %v284_v50, %v216_v49 }
 0x109   :  { %v448_v52 = vpop.f32.mrf.mxu0 }
 0x10a   :  { %v288_v53 = vmax.f32 %v285_v51, 0.0 }
 0x10c   :  { %482 = vmatmul.mubr.f32.vlgmr.msra.gmra.mxu1 %v288_v53 }
 0x1cc   :  { %v361_v60 = vpop.f32.mrf.mxu1 }
 0x1cd   :  { %v362_v61 = vadd.f32 %v361_v60, %v293_v59 }
 0x1ce   :  { %v483_v62 = vpop.f32.mrf.mxu1 }
 0x1cf   :  { %365 = vst [vmem:[#allocation3] sm:$0xff] %v362_v61 }
 0x1d0   :  { %498 = shalt.err (!%p495_p4)
}
 0x1d1   :  { %375 = dma.vmem_to_hbm [thread:$0]  %s373_s24, 128, %s899_s10, [#allocation4]  }
 0x1d2   :  { %507 = dma.done.wait [#allocation4], 128  }
 0x1d3   :  { %508 = vsyncadd [#allocation4], 4294967168 }
 0x1d4   :  { %379 = vsyncpa [#allocation4], 1 }

</bundles_post_ra>
